<compile_context>
chip_gen: v7x
topology: tpu7x:2x2x1
jax: 0.10.0
libtpu: 0.0.40
codegen_flags: <defaults>
</compile_context>

<pallas_src>
import functools

import jax
import jax.numpy as jnp
from jax import lax
from jax.experimental import pallas as pl
from jax.experimental.pallas import tpu as pltpu


# ----------------------------------------------------------------------------
# Fused encoder + decoder kernel (one batch tile per grid step)
# ----------------------------------------------------------------------------
def _psgn4d_fused_kernel(x_ref, ew1_ref, ew2_ref, dw1_ref, dw2_ref, dw3_ref,
                         bias_ref, out_ref, pooled_ref, *, nc, n_chunks):
    n_b, d_in, _ = x_ref.shape                 # (bt, d_in, N)
    hidden = ew1_ref.shape[1]
    c_dim = ew2_ref.shape[1]
    dh1 = dw1_ref.shape[1]
    dh2 = dw2_ref.shape[1]
    out_dim = dw3_ref.shape[1]

    # Consolidated bias slab: static, lane-aligned slices.
    o1 = hidden
    o2 = o1 + c_dim
    o3 = o2 + dh1
    o4 = o3 + dh2
    b_enc1 = bias_ref[:, 0:o1]                 # (1, hidden)
    b_enc2 = bias_ref[:, o1:o2]                # (1, c_dim)
    b_dec1 = bias_ref[:, o2:o3]                # (1, dh1)
    b_dec2 = bias_ref[:, o3:o4]                # (1, dh2)
    b_dec3 = bias_ref[:, o4:o4 + out_dim]      # (1, out_dim)

    w1 = ew1_ref[...]                          # (d_in, hidden) f32

    # ---------------- encoder: per-point FC -> ReLU -> max over points -------
    # Chunked over N: the pre-pool activation is at most (nc, hidden) and the
    # max-pool is a running max, so live VMEM is independent of the cloud size.
    def pool_one_cloud(b):
        def chunk_body(ci, running):
            start = ci * nc
            if nc % 128 == 0:
                start = pl.multiple_of(start, 128)
            xc = x_ref[pl.ds(b, 1), :, pl.ds(start, nc)]   # (1, d_in, nc)
            xc = xc.reshape(d_in, nc)
            # h[n, j] = sum_k x[k, n] * w1[k, j]   (trans-A MXU matmul, K=d_in)
            hc = lax.dot_general(xc, w1, (((0,), (0,)), ((), ())),
                                 preferred_element_type=jnp.float32)
            hc = jnp.maximum(hc + b_enc1, 0.0)             # (nc, hidden)
            return jnp.maximum(running, jnp.max(hc, axis=0, keepdims=True))

        init = jnp.full((1, hidden), -jnp.inf, dtype=jnp.float32)
        return lax.fori_loop(0, n_chunks, chunk_body, init)

    @pl.loop(0, n_b)
    def _(b):
        pooled_ref[pl.ds(b, 1), :] = pool_one_cloud(b)     # (1, hidden) row

    # ---------------- encoder FC2 + decoder (c never leaves the chip) --------
    pooled = pooled_ref[...]                               # (bt, hidden) f32
    c = jnp.dot(pooled.astype(ew2_ref.dtype), ew2_ref[...],
                preferred_element_type=jnp.float32) + b_enc2
    h1 = jnp.maximum(
        jnp.dot(c.astype(dw1_ref.dtype), dw1_ref[...],
                preferred_element_type=jnp.float32) + b_dec1, 0.0)
    h2 = jnp.maximum(
        jnp.dot(h1.astype(dw2_ref.dtype), dw2_ref[...],
                preferred_element_type=jnp.float32) + b_dec2, 0.0)
    out = jnp.dot(h2.astype(dw3_ref.dtype), dw3_ref[...],
                  preferred_element_type=jnp.float32) + b_dec3
    out_ref[...] = out.astype(out_ref.dtype)               # (bt, n_points*4)


# ----------------------------------------------------------------------------
# Tiling helpers
# ----------------------------------------------------------------------------
def _choose_tiling(B, max_bt=128):
    """Batch tile: multiple of 8 (sublane), as large as possible for the MXU's
    M dimension, capped so the grid has >=2 steps (both v7x TCs) when the
    padded batch allows it.  (Use max_bt=256 for big batches on v6e/v7x.)"""
    b8 = ((max(B, 1) + 7) // 8) * 8
    bt = max_bt
    while bt > 8 and bt > b8 // 2:
        bt //= 2
    bt = max(bt, 8)
    n_tiles = -(-B // bt)
    return bt, n_tiles, n_tiles * bt


def _choose_point_chunk(N, cap=256):
    """Largest divisor of N that is <= cap, bounding the (nc, hidden) f32
    layer-1 chunk independent of the cloud size."""
    nc = 1
    for cand in range(1, min(N, cap) + 1):
        if N % cand == 0:
            nc = cand
    return nc, N // nc


def _padded_block_bytes(shape, dtype):
    """Rough VMEM bytes of one pipeline buffer after (sublane, lane) padding."""
    itemsize = jnp.dtype(dtype).itemsize
    dims = list(shape)
    dims[-1] = -(-dims[-1] // 128) * 128
    if len(dims) >= 2:
        sub = 8 * max(1, 4 // itemsize)
        dims[-2] = -(-dims[-2] // sub) * sub
    n = 1
    for d in dims:
        n *= d
    return n * itemsize


# ----------------------------------------------------------------------------
# Wrapper: forward(x) = decoder(encoder(x))
# ----------------------------------------------------------------------------
def psgn4d_forward(x, params):
    B, N, d_in = x.shape
    ew1, eb1 = params["enc_w1"], params["enc_b1"]
    ew2, eb2 = params["enc_w2"], params["enc_b2"]
    dw1, db1 = params["dec_w1"], params["dec_b1"]
    dw2, db2 = params["dec_w2"], params["dec_b2"]
    dw3, db3 = params["dec_w3"], params["dec_b3"]

    hidden = ew1.shape[1]
    c_dim = ew2.shape[1]
    dh1 = dw1.shape[1]
    dh2 = dw2.shape[1]
    out_dim = dw3.shape[1]
    n_points, point_dim = params["n_points"], params["point_dim"]
    assert out_dim == n_points * point_dim

    bt, n_tiles, B_pad = _choose_tiling(B)
    nc, n_chunks = _choose_point_chunk(N)

    # Lane-dense input layout: (B, d_in, N), padded to a multiple of bt.
    x_t = jnp.transpose(x, (0, 2, 1)).astype(jnp.float32)
    if B_pad != B:
        x_t = jnp.pad(x_t, ((0, B_pad - B), (0, 0), (0, 0)))

    # Consolidated bias slab (single operand).
    bias_slab = jnp.concatenate([eb1, eb2, db1, db2, db3], axis=1)
    total_bias = hidden + c_dim + dh1 + dh2 + out_dim
    assert bias_slab.shape == (1, total_bias)

    # VMEM budget (explicit, v7x-safe): double-buffered blocks + scratch.
    block_list = [
        ((bt, d_in, N), x_t.dtype),
        ((d_in, hidden), ew1.dtype),
        ((hidden, c_dim), ew2.dtype),
        ((c_dim, dh1), dw1.dtype),
        ((dh1, dh2), dw2.dtype),
        ((dh2, out_dim), dw3.dtype),
        ((1, total_bias), bias_slab.dtype),
        ((bt, out_dim), jnp.float32),
    ]
    est_vmem = 2 * sum(_padded_block_bytes(s, d) for s, d in block_list)
    est_vmem += _padded_block_bytes((bt, hidden), jnp.float32)       # pooled
    est_vmem += 2 * _padded_block_bytes((nc, hidden), jnp.float32)   # h chunk
    vmem_limit = int(min(max(est_vmem + (8 << 20), 16 << 20), 40 << 20))

    flops = 2 * B_pad * (N * d_in * hidden + hidden * c_dim + c_dim * dh1
                         + dh1 * dh2 + dh2 * out_dim)
    weights = (ew1, ew2, dw1, dw2, dw3, bias_slab)
    bytes_accessed = (int(x_t.size) * x_t.dtype.itemsize
                      + sum(int(p.size) * p.dtype.itemsize for p in weights)
                      + B_pad * out_dim * 4)

    kernel = functools.partial(_psgn4d_fused_kernel, nc=nc, n_chunks=n_chunks)

    flat = pl.pallas_call(
        kernel,
        out_shape=jax.ShapeDtypeStruct((B_pad, out_dim), jnp.float32),
        grid_spec=pltpu.PrefetchScalarGridSpec(
            num_scalar_prefetch=0,
            grid=(n_tiles,),
            in_specs=[
                # point clouds: one batch tile per step, N on the lane axis
                pl.BlockSpec((bt, d_in, N), lambda i: (i, 0, 0)),
                # weights (constant index_map -> loaded once)
                pl.BlockSpec((d_in, hidden), lambda i: (0, 0)),
                pl.BlockSpec((hidden, c_dim), lambda i: (0, 0)),
                pl.BlockSpec((c_dim, dh1), lambda i: (0, 0)),
                pl.BlockSpec((dh1, dh2), lambda i: (0, 0)),
                pl.BlockSpec((dh2, out_dim), lambda i: (0, 0)),
                # consolidated bias slab
                pl.BlockSpec((1, total_bias), lambda i: (0, 0)),
            ],
            # lane-dense output slab (bt, n_points*point_dim)
            out_specs=pl.BlockSpec((bt, out_dim), lambda i: (i, 0)),
            scratch_shapes=[pltpu.VMEM((bt, hidden), jnp.float32)],
        ),
        compiler_params=pltpu.CompilerParams(
            dimension_semantics=("parallel",),
            vmem_limit_bytes=vmem_limit),
        cost_estimate=pl.CostEstimate(flops=int(flops), transcendentals=0,
                                      bytes_accessed=int(bytes_accessed)),
    )(x_t, ew1, ew2, dw1, dw2, dw3, bias_slab)

    # glue: drop batch padding, reshape flat point vector to (B, n_points, 4)
    return flat[:B].reshape(B, n_points, point_dim)


# ----------------------------------------------------------------------------
# Pure-JAX reference (same arithmetic: f32 layer 1, bf16 MXU layers)
# ----------------------------------------------------------------------------
def psgn4d_reference(x, params):
    h = jnp.einsum("bnd,dh->bnh", x, params["enc_w1"],
                   precision=jax.lax.Precision.HIGHEST) + params["enc_b1"]
    h = jnp.maximum(h, 0.0)
    pooled = jnp.max(h, axis=1)
    c = jnp.dot(pooled.astype(params["enc_w2"].dtype), params["enc_w2"],
                preferred_element_type=jnp.float32) + params["enc_b2"]
    h1 = jnp.maximum(
        jnp.dot(c.astype(params["dec_w1"].dtype), params["dec_w1"],
                preferred_element_type=jnp.float32) + params["dec_b1"], 0.0)
    h2 = jnp.maximum(
        jnp.dot(h1.astype(params["dec_w2"].dtype), params["dec_w2"],
                preferred_element_type=jnp.float32) + params["dec_b2"], 0.0)
    out = jnp.dot(h2.astype(params["dec_w3"].dtype), params["dec_w3"],
                  preferred_element_type=jnp.float32) + params["dec_b3"]
    return out.reshape(x.shape[0], params["n_points"], params["point_dim"])


# ----------------------------------------------------------------------------
# Deterministic parameter construction (synthetic weights, no checkpoint)
# ----------------------------------------------------------------------------
def init_params(key, d_in=4, hidden=128, c_dim=128, dec_hidden=128,
                n_points=256, point_dim=4):
    ks = jax.random.split(key, 5)

    def w(k, shape, dtype):
        fan_in = shape[0]
        return (jax.random.normal(k, shape, jnp.float32) /
                jnp.sqrt(fan_in)).astype(dtype)

    return {
        # encoder (PointNet-style): per-point FC -> maxpool -> FC
        "enc_w1": w(ks[0], (d_in, hidden), jnp.float32),    # layer 1: f32
        "enc_b1": jnp.zeros((1, hidden), jnp.float32),
        "enc_w2": w(ks[1], (hidden, c_dim), jnp.bfloat16),  # MXU layers: bf16
        "enc_b2": jnp.zeros((1, c_dim), jnp.float32),
        # decoder MLP: c -> hidden -> hidden -> n_points * point_dim
        "dec_w1": w(ks[2], (c_dim, dec_hidden), jnp.bfloat16),
        "dec_b1": jnp.zeros((1, dec_hidden), jnp.float32),
        "dec_w2": w(ks[3], (dec_hidden, dec_hidden), jnp.bfloat16),
        "dec_b2": jnp.zeros((1, dec_hidden), jnp.float32),
        "dec_w3": w(ks[4], (dec_hidden, n_points * point_dim), jnp.bfloat16),
        "dec_b3": jnp.zeros((1, n_points * point_dim), jnp.float32),
        "n_points": n_points,
        "point_dim": point_dim,
    }


if __name__ == "__main__":
    key = jax.random.PRNGKey(0)
    k_x, k_p = jax.random.split(key)

    B, N, D_in = 2, 128, 4            # 4D point-cloud input: (batch, points, 4)
    params = init_params(k_p, d_in=D_in)
    x = jax.random.normal(k_x, (B, N, D_in), jnp.float32)

    points = psgn4d_forward(x, params)
    points = jax.block_until_ready(points)

    ref = psgn4d_reference(x, params)

    assert points.shape == (B, params["n_points"], params["point_dim"])
    assert points.dtype == jnp.float32
    assert bool(jnp.allclose(points, ref, rtol=2e-2, atol=2e-2)), (
        "kernel/reference mismatch")
    # TODO(synk): image-conditioned encoder path (input_type='img', resnet-18)
    # is out of scope; only the pointcloud PointNet encoder is implemented.
    print("KERNEL_OK")
</pallas_src>

<mosaic_0001>
module attributes {stable_mosaic.version = 11 : i64} {
  func.func @_psgn4d_fused_kernel(%arg0: i32, %arg1: memref<8x4x128xf32, #tpu.memory_space<vmem>>, %arg2: memref<4x128xf32, #tpu.memory_space<vmem>>, %arg3: memref<128x128xbf16, #tpu.memory_space<vmem>>, %arg4: memref<128x128xbf16, #tpu.memory_space<vmem>>, %arg5: memref<128x128xbf16, #tpu.memory_space<vmem>>, %arg6: memref<128x1024xbf16, #tpu.memory_space<vmem>>, %arg7: memref<1x1536xf32, #tpu.memory_space<vmem>>, %arg8: memref<8x1024xf32, #tpu.memory_space<vmem>>, %arg9: memref<8x128xf32, #tpu.memory_space<vmem>>) attributes {dimension_semantics = [#tpu.dimension_semantics<parallel>], iteration_bounds = array<i64: 1>, scalar_prefetch = 0 : i64, scratch_operands = 1 : i64, tpu.core_type = #tpu.core_type<tc>, window_params = [{transform_indices = @transform_0, window_bounds = array<i64: 8, 4, 128>}, {pipeline_mode = #tpu.pipeline_mode<synchronous>, transform_indices = @transform_1, window_bounds = array<i64: 4, 128>}, {pipeline_mode = #tpu.pipeline_mode<synchronous>, transform_indices = @transform_2, window_bounds = array<i64: 128, 128>}, {pipeline_mode = #tpu.pipeline_mode<synchronous>, transform_indices = @transform_3, window_bounds = array<i64: 128, 128>}, {pipeline_mode = #tpu.pipeline_mode<synchronous>, transform_indices = @transform_4, window_bounds = array<i64: 128, 128>}, {pipeline_mode = #tpu.pipeline_mode<synchronous>, transform_indices = @transform_5, window_bounds = array<i64: 128, 1024>}, {pipeline_mode = #tpu.pipeline_mode<synchronous>, transform_indices = @transform_6, window_bounds = array<i64: 1, 1536>}, {transform_indices = @transform_7, window_bounds = array<i64: 8, 1024>}]} {
    %c0 = arith.constant 0 : index
    %c0_0 = arith.constant 0 : index
    %0 = vector.load %arg7[%c0, %c0_0] : memref<1x1536xf32, #tpu.memory_space<vmem>>, vector<1x128xf32>
    %c0_1 = arith.constant 0 : index
    %c128 = arith.constant 128 : index
    %1 = vector.load %arg7[%c0_1, %c128] : memref<1x1536xf32, #tpu.memory_space<vmem>>, vector<1x128xf32>
    %c0_2 = arith.constant 0 : index
    %c256 = arith.constant 256 : index
    %2 = vector.load %arg7[%c0_2, %c256] : memref<1x1536xf32, #tpu.memory_space<vmem>>, vector<1x128xf32>
    %c0_3 = arith.constant 0 : index
    %c384 = arith.constant 384 : index
    %3 = vector.load %arg7[%c0_3, %c384] : memref<1x1536xf32, #tpu.memory_space<vmem>>, vector<1x128xf32>
    %c0_4 = arith.constant 0 : index
    %c512 = arith.constant 512 : index
    %4 = vector.load %arg7[%c0_4, %c512] : memref<1x1536xf32, #tpu.memory_space<vmem>>, vector<1x1024xf32>
    %c0_5 = arith.constant 0 : index
    %c0_6 = arith.constant 0 : index
    %5 = vector.load %arg2[%c0_5, %c0_6] : memref<4x128xf32, #tpu.memory_space<vmem>>, vector<4x128xf32>
    %c0_i32 = arith.constant 0 : i32
    %c8_i32 = arith.constant 8 : i32
    %6 = arith.addi %c0_i32, %c8_i32 : i32
    %c1_i32 = arith.constant 1 : i32
    scf.for %arg10 = %c0_i32 to %6 step %c1_i32  : i32 {
      %c1_i32_25 = arith.constant 1 : i32
      %33 = arith.muli %arg10, %c1_i32_25 : i32
      %c0_i32_26 = arith.constant 0 : i32
      %34 = arith.addi %c0_i32_26, %33 : i32
      %cst_27 = arith.constant 0xFF800000 : f32
      %35 = vector.broadcast %cst_27 : f32 to vector<1x128xf32>
      %c0_i32_28 = arith.constant 0 : i32
      %c128_i32 = arith.constant 128 : i32
      %36 = arith.muli %c0_i32_28, %c128_i32 : i32
      %37 = tpu.assume_multiple %36, 128 : i32
      %38 = arith.index_cast %34 : i32 to index
      %c0_29 = arith.constant 0 : index
      %39 = arith.index_cast %37 : i32 to index
      %40 = vector.load %arg1[%38, %c0_29, %39] : memref<8x4x128xf32, #tpu.memory_space<vmem>>, vector<1x4x128xf32>
      %41 = vector.shape_cast %40 : vector<1x4x128xf32> to vector<4x128xf32>
      %cst_30 = arith.constant dense<0.000000e+00> : vector<128x128xf32>
      %42 = tpu.matmul %41, %5, %cst_30 {dimension_numbers = #tpu.dot_dimension_numbers<[0], [0], [1], [1], [0, 1, 1, 1], [], []>} : vector<4x128xf32>, vector<4x128xf32>, vector<128x128xf32> -> vector<128x128xf32>
      %43 = vector.broadcast %0 : vector<1x128xf32> to vector<128x128xf32>
      %44 = arith.addf %42, %43 : vector<128x128xf32>
      %cst_31 = arith.constant 0.000000e+00 : f32
      %45 = vector.broadcast %cst_31 : f32 to vector<128x128xf32>
      %46 = arith.maximumf %44, %45 : vector<128x128xf32>
      %cst_32 = arith.constant dense<0xFF800000> : vector<128xf32>
      %47 = vector.multi_reduction <maximumf>, %46, %cst_32 [0] : vector<128x128xf32> to vector<128xf32>
      %48 = vector.shape_cast %47 : vector<128xf32> to vector<1x128xf32>
      %49 = arith.maximumf %35, %48 : vector<1x128xf32>
      %c1_i32_33 = arith.constant 1 : i32
      %50 = arith.index_cast %34 : i32 to index
      %c0_34 = arith.constant 0 : index
      %51 = vector.load %arg9[%50, %c0_34] : memref<8x128xf32, #tpu.memory_space<vmem>>, vector<1x128xf32>
      tpu.vector_store %arg9[%50, %c0_34], %49 {strides = array<i32>} : memref<8x128xf32, #tpu.memory_space<vmem>>, vector<1x128xf32>,
    }
    %c8_i32_7 = arith.constant 8 : i32
    %c0_8 = arith.constant 0 : index
    %c0_9 = arith.constant 0 : index
    %7 = vector.load %arg9[%c0_8, %c0_9] : memref<8x128xf32, #tpu.memory_space<vmem>>, vector<8x128xf32>
    %8 = arith.truncf %7 : vector<8x128xf32> to vector<8x128xbf16>
    %c0_10 = arith.constant 0 : index
    %c0_11 = arith.constant 0 : index
    %9 = vector.load %arg3[%c0_10, %c0_11] : memref<128x128xbf16, #tpu.memory_space<vmem>>, vector<128x128xbf16>
    %cst = arith.constant dense<0.000000e+00> : vector<8x128xf32>
    %10 = tpu.matmul %8, %9, %cst {dimension_numbers = #tpu.dot_dimension_numbers<[1], [0], [0], [1], [0, 0, 1, 1], [], []>} : vector<8x128xbf16>, vector<128x128xbf16>, vector<8x128xf32> -> vector<8x128xf32>
    %11 = vector.broadcast %1 : vector<1x128xf32> to vector<8x128xf32>
    %12 = arith.addf %10, %11 : vector<8x128xf32>
    %13 = arith.truncf %12 : vector<8x128xf32> to vector<8x128xbf16>
    %c0_12 = arith.constant 0 : index
    %c0_13 = arith.constant 0 : index
    %14 = vector.load %arg4[%c0_12, %c0_13] : memref<128x128xbf16, #tpu.memory_space<vmem>>, vector<128x128xbf16>
    %cst_14 = arith.constant dense<0.000000e+00> : vector<8x128xf32>
    %15 = tpu.matmul %13, %14, %cst_14 {dimension_numbers = #tpu.dot_dimension_numbers<[1], [0], [0], [1], [0, 0, 1, 1], [], []>} : vector<8x128xbf16>, vector<128x128xbf16>, vector<8x128xf32> -> vector<8x128xf32>
    %16 = vector.broadcast %2 : vector<1x128xf32> to vector<8x128xf32>
    %17 = arith.addf %15, %16 : vector<8x128xf32>
    %cst_15 = arith.constant 0.000000e+00 : f32
    %18 = vector.broadcast %cst_15 : f32 to vector<8x128xf32>
    %19 = arith.maximumf %17, %18 : vector<8x128xf32>
    %20 = arith.truncf %19 : vector<8x128xf32> to vector<8x128xbf16>
    %c0_16 = arith.constant 0 : index
    %c0_17 = arith.constant 0 : index
    %21 = vector.load %arg5[%c0_16, %c0_17] : memref<128x128xbf16, #tpu.memory_space<vmem>>, vector<128x128xbf16>
    %cst_18 = arith.constant dense<0.000000e+00> : vector<8x128xf32>
    %22 = tpu.matmul %20, %21, %cst_18 {dimension_numbers = #tpu.dot_dimension_numbers<[1], [0], [0], [1], [0, 0, 1, 1], [], []>} : vector<8x128xbf16>, vector<128x128xbf16>, vector<8x128xf32> -> vector<8x128xf32>
    %23 = vector.broadcast %3 : vector<1x128xf32> to vector<8x128xf32>
    %24 = arith.addf %22, %23 : vector<8x128xf32>
    %cst_19 = arith.constant 0.000000e+00 : f32
    %25 = vector.broadcast %cst_19 : f32 to vector<8x128xf32>
    %26 = arith.maximumf %24, %25 : vector<8x128xf32>
    %27 = arith.truncf %26 : vector<8x128xf32> to vector<8x128xbf16>
    %c0_20 = arith.constant 0 : index
    %c0_21 = arith.constant 0 : index
    %28 = vector.load %arg6[%c0_20, %c0_21] : memref<128x1024xbf16, #tpu.memory_space<vmem>>, vector<128x1024xbf16>
    %cst_22 = arith.constant dense<0.000000e+00> : vector<8x1024xf32>
    %29 = tpu.matmul %27, %28, %cst_22 {dimension_numbers = #tpu.dot_dimension_numbers<[1], [0], [0], [1], [0, 0, 1, 1], [], []>} : vector<8x128xbf16>, vector<128x1024xbf16>, vector<8x1024xf32> -> vector<8x1024xf32>
    %30 = vector.broadcast %4 : vector<1x1024xf32> to vector<8x1024xf32>
    %31 = arith.addf %29, %30 : vector<8x1024xf32>
    %c0_23 = arith.constant 0 : index
    %c0_24 = arith.constant 0 : index
    %32 = vector.load %arg8[%c0_23, %c0_24] : memref<8x1024xf32, #tpu.memory_space<vmem>>, vector<8x1024xf32>
    tpu.vector_store %arg8[%c0_23, %c0_24], %31 {strides = array<i32>} : memref<8x1024xf32, #tpu.memory_space<vmem>>, vector<8x1024xf32>,
    return
  }
  func.func @transform_0(%arg0: i32) -> (i32, i32, i32) {
    %c0_i32 = arith.constant 0 : i32
    %c0_i32_0 = arith.constant 0 : i32
    %c0_i32_1 = arith.constant 0 : i32
    return %arg0, %c0_i32, %c0_i32_0 : i32, i32, i32
  }
  func.func @transform_1(%arg0: i32) -> (i32, i32) {
    %c0_i32 = arith.constant 0 : i32
    %c0_i32_0 = arith.constant 0 : i32
    %c0_i32_1 = arith.constant 0 : i32
    return %c0_i32, %c0_i32_0 : i32, i32
  }
  func.func @transform_2(%arg0: i32) -> (i32, i32) {
    %c0_i32 = arith.constant 0 : i32
    %c0_i32_0 = arith.constant 0 : i32
    %c0_i32_1 = arith.constant 0 : i32
    return %c0_i32, %c0_i32_0 : i32, i32
  }
  func.func @transform_3(%arg0: i32) -> (i32, i32) {
    %c0_i32 = arith.constant 0 : i32
    %c0_i32_0 = arith.constant 0 : i32
    %c0_i32_1 = arith.constant 0 : i32
    return %c0_i32, %c0_i32_0 : i32, i32
  }
  func.func @transform_4(%arg0: i32) -> (i32, i32) {
    %c0_i32 = arith.constant 0 : i32
    %c0_i32_0 = arith.constant 0 : i32
    %c0_i32_1 = arith.constant 0 : i32
    return %c0_i32, %c0_i32_0 : i32, i32
  }
  func.func @transform_5(%arg0: i32) -> (i32, i32) {
    %c0_i32 = arith.constant 0 : i32
    %c0_i32_0 = arith.constant 0 : i32
    %c0_i32_1 = arith.constant 0 : i32
    return %c0_i32, %c0_i32_0 : i32, i32
  }
  func.func @transform_6(%arg0: i32) -> (i32, i32) {
    %c0_i32 = arith.constant 0 : i32
    %c0_i32_0 = arith.constant 0 : i32
    %c0_i32_1 = arith.constant 0 : i32
    return %c0_i32, %c0_i32_0 : i32, i32
  }
  func.func @transform_7(%arg0: i32) -> (i32, i32) {
    %c0_i32 = arith.constant 0 : i32
    %c0_i32_0 = arith.constant 0 : i32
    return %arg0, %c0_i32 : i32, i32
  }
}

</mosaic_0001>

<bundles_post_ra>
// kernel: tpu_custom_call.1
= control target key start
LH: loop header
LB: loop body
LE: loop exit
PB: predicated region body
PF: predicated region fallthrough
CT: control target
= control target key end

     0   :  { %12 = vsyncpa [#allocation4], 0  ;;  %s2090_s0 = inlined_call_operand.hbm [shape: f32[8,4,128], index: 0, kind: input, shape index: {}]   ;;  %s2091_s1 = inlined_call_operand.hbm [shape: f32[4,128], index: 1, kind: input, shape index: {}]   ;;  %s2092_s2 = inlined_call_operand.hbm [shape: bf16[128,128], index: 2, kind: input, shape index: {}]   ;;  %s2093_s3 = inlined_call_operand.hbm [shape: bf16[128,128], index: 3, kind: input, shape index: {}]   ;;  %s2094_s4 = inlined_call_operand.hbm [shape: bf16[128,128], index: 4, kind: input, shape index: {}]   ;;  %s2095_s5 = inlined_call_operand.hbm [shape: bf16[128,1024], index: 5, kind: input, shape index: {}]   ;;  %s2096_s6 = inlined_call_operand.vmem [shape: f32[1,1536], index: 6, kind: input, shape index: {}]   ;;  %s2097_s7 = inlined_call_operand.hbm [shape: f32[8,1024], index: 7, kind: output, shape index: {}]  }
   0x1   :  { %13 = vsyncpa [#allocation7], 0 }
   0x2   :  { %14 = vsyncpa [#allocation10], 0 }
   0x3   :  { %15 = vsyncpa [#allocation13], 0 }
   0x4   :  { %16 = vsyncpa [#allocation5], 0  ;;  %s1820_s24 = smov [#allocation6]   ;;  %s1648_s28 = scalar_lea.hbm %s2091_s1, 64 }
   0x5   :  { %s35_s25 = sshll.u32 %s1820_s24, 4  ;;  %p1649_p0 = scmp.ne.s32.totalorder %s2091_s1, %s1648_s28  ;;  %s36_s25 = int_to_ptr.vmem [resolvable:$true] %s35_s25 }
   0x6   :  { %p1652_p1 = scmp.lt.u32.totalorder %s1648_s28, %s2091_s1 }
   0x8   :  { %p1654_p2 = pnand %p1652_p1, %p1649_p0 }
   0xa   :  { %1657 = shalt.err (!%p1654_p2)
}
   0xb   :  { %s1658_s10 = scalar_lea.vmem %s36_s25, 64  ;;  %p1663_p4 = scmp.lt.s32.totalorder %s36_s25, %s36_s25 }
   0xc   :  { %p1659_p3 = scmp.ne.s32.totalorder %s36_s25, %s1658_s10  ;;  %p1664_p5 = scmp.lt.s32.totalorder %s1658_s10, %s1658_s10 }
   0xe   :  { %p1665_p6 = por %p1664_p5, %p1663_p4 }
  0x10   :  { %p1666_p7 = pnand %p1665_p6, %p1659_p3 }
  0x12   :  { %1669 = shalt.err (!%p1666_p7)
}
  0x13   :  { %38 = dma.hbm_to_vmem [thread:$0]  %s2091_s1, 64, %s36_s25, [#allocation7]  }
  0x14   :  { %s1821_s13 = smov [#allocation9]   ;;  %s1822_s15 = smov [#allocation3]  }
  0x15   :  { %s56_s14 = sshll.u32 %s1821_s13, 4  ;;  %s22_s16 = sshll.u32 %s1822_s15, 4  ;;  %s57_s14 = int_to_ptr.vmem [resolvable:$true] %s56_s14  ;;  %s23_s16 = int_to_ptr.vmem [resolvable:$true] %s22_s16 }
  0x16   :  { %s1670_s19 = scalar_lea.hbm %s2093_s3, 1024 }
  0x17   :  { %p1671_p8 = scmp.ne.s32.totalorder %s2093_s3, %s1670_s19  ;;  %p1674_p9 = scmp.lt.u32.totalorder %s1670_s19, %s2093_s3 }
  0x19   :  { %p1676_p10 = pnand %p1674_p9, %p1671_p8 }
  0x1b   :  { %1679 = shalt.err (!%p1676_p10)
}
  0x1c   :  { %s1680_s1 = scalar_lea.vmem %s57_s14, 1024  ;;  %p1685_p12 = scmp.lt.s32.totalorder %s57_s14, %s57_s14 }
  0x1d   :  { %p1681_p11 = scmp.ne.s32.totalorder %s57_s14, %s1680_s1  ;;  %p1686_p13 = scmp.lt.s32.totalorder %s1680_s1, %s1680_s1 }
  0x1f   :  { %p1687_p0 = por %p1686_p13, %p1685_p12 }
  0x21   :  { %p1688_p1 = pnand %p1687_p0, %p1681_p11 }
  0x23   :  { %1691 = shalt.err (!%p1688_p1)
}
  0x24   :  { %s1823_s24 = smov 64   ;;  %s1824_s25 = smov 4  }
  0x25   :  { %62 = dma.hbm_to_vmem [thread:$0]  %s2093_s3, 1024, %s57_s14, [#allocation10], %s1823_s24, %s1823_s24, %s1824_s25  }
  0x26   :  { %s1692_s30 = scalar_lea.hbm %s2090_s0, 512 }
  0x27   :  { %p1693_p2 = scmp.ne.s32.totalorder %s2090_s0, %s1692_s30  ;;  %p1696_p3 = scmp.lt.u32.totalorder %s1692_s30, %s2090_s0 }
  0x29   :  { %p1698_p4 = pnand %p1696_p3, %p1693_p2 }
  0x2b   :  { %1701 = shalt.err (!%p1698_p4)
}
  0x2c   :  { %s1702_s12 = scalar_lea.vmem %s23_s16, 512  ;;  %p1707_p6 = scmp.lt.s32.totalorder %s23_s16, %s23_s16 }
  0x2d   :  { %p1703_p5 = scmp.ne.s32.totalorder %s23_s16, %s1702_s12  ;;  %p1708_p7 = scmp.lt.s32.totalorder %s1702_s12, %s1702_s12 }
  0x2f   :  { %p1709_p8 = por %p1708_p7, %p1707_p6 }
  0x31   :  { %p1710_p9 = pnand %p1709_p8, %p1703_p5 }
  0x33   :  { %1713 = shalt.err (!%p1710_p9)
}
  0x34   :  { %28 = dma.hbm_to_vmem [thread:$0]  %s2090_s0, 512, %s23_s16, [#allocation4], %s1823_s24, %s1823_s24, %s1824_s25  }
  0x35   :  { %s1825_s14 = smov [#allocation8]   ;;  %s1826_s17 = smov [#allocation11]  }
  0x36   :  { %s44_s15 = sshll.u32 %s1825_s14, 4  ;;  %s68_s18 = sshll.u32 %s1826_s17, 4  ;;  %s45_s15 = int_to_ptr.vmem [resolvable:$true] %s44_s15  ;;  %s69_s18 = int_to_ptr.vmem [resolvable:$true] %s68_s18 }
  0x37   :  { %s1714_s21 = scalar_lea.hbm %s2092_s2, 1024 }
  0x38   :  { %p1715_p10 = scmp.ne.s32.totalorder %s2092_s2, %s1714_s21  ;;  %p1718_p11 = scmp.lt.u32.totalorder %s1714_s21, %s2092_s2 }
  0x3a   :  { %p1720_p12 = pnand %p1718_p11, %p1715_p10 }
  0x3c   :  { %1723 = shalt.err (!%p1720_p12)
}
  0x3d   :  { %s1724_s0 = scalar_lea.vmem %s45_s15, 1024  ;;  %p1729_p0 = scmp.lt.s32.totalorder %s45_s15, %s45_s15 }
  0x3e   :  { %p1725_p13 = scmp.ne.s32.totalorder %s45_s15, %s1724_s0  ;;  %p1730_p1 = scmp.lt.s32.totalorder %s1724_s0, %s1724_s0 }
  0x40   :  { %p1731_p2 = por %p1730_p1, %p1729_p0 }
  0x42   :  { %p1732_p3 = pnand %p1731_p2, %p1725_p13 }
  0x44   :  { %1735 = shalt.err (!%p1732_p3)
}
  0x45   :  { %50 = dma.hbm_to_vmem [thread:$0]  %s2092_s2, 1024, %s45_s15, [#allocation7], %s1823_s24, %s1823_s24, %s1824_s25  }
  0x46   :  { %s1736_s30 = scalar_lea.hbm %s2094_s4, 1024 }
  0x47   :  { %p1737_p4 = scmp.ne.s32.totalorder %s2094_s4, %s1736_s30  ;;  %p1740_p5 = scmp.lt.u32.totalorder %s1736_s30, %s2094_s4 }
  0x49   :  { %p1742_p6 = pnand %p1740_p5, %p1737_p4 }
  0x4b   :  { %1745 = shalt.err (!%p1742_p6)
}
  0x4c   :  { %s1746_s12 = scalar_lea.vmem %s69_s18, 1024  ;;  %p1751_p8 = scmp.lt.s32.totalorder %s69_s18, %s69_s18 }
  0x4d   :  { %p1747_p7 = scmp.ne.s32.totalorder %s69_s18, %s1746_s12  ;;  %p1752_p9 = scmp.lt.s32.totalorder %s1746_s12, %s1746_s12 }
  0x4f   :  { %p1753_p10 = por %p1752_p9, %p1751_p8 }
  0x51   :  { %p1754_p11 = pnand %p1753_p10, %p1747_p7 }
  0x53   :  { %1757 = shalt.err (!%p1754_p11)
}
  0x54   :  { %74 = dma.hbm_to_vmem [thread:$0]  %s2094_s4, 1024, %s69_s18, [#allocation10], %s1823_s24, %s1823_s24, %s1824_s25  }
  0x55   :  { %s1827_s13 = smov [#allocation12]   ;;  %s1758_s19 = scalar_lea.hbm %s2095_s5, 8192 }
  0x56   :  { %s80_s14 = sshll.u32 %s1827_s13, 4  ;;  %p1759_p12 = scmp.ne.s32.totalorder %s2095_s5, %s1758_s19  ;;  %s81_s14 = int_to_ptr.vmem [resolvable:$true] %s80_s14 }
  0x57   :  { %p1762_p13 = scmp.lt.u32.totalorder %s1758_s19, %s2095_s5 }
  0x59   :  { %p1764_p0 = pnand %p1762_p13, %p1759_p12 }
  0x5b   :  { %1767 = shalt.err (!%p1764_p0)
}
  0x5c   :  { %s1768_s1 = scalar_lea.vmem %s81_s14, 8192  ;;  %p1773_p2 = scmp.lt.s32.totalorder %s81_s14, %s81_s14 }
  0x5d   :  { %p1769_p1 = scmp.ne.s32.totalorder %s81_s14, %s1768_s1  ;;  %p1774_p3 = scmp.lt.s32.totalorder %s1768_s1, %s1768_s1 }
  0x5f   :  { %p1775_p4 = por %p1774_p3, %p1773_p2 }
  0x61   :  { %p1776_p5 = pnand %p1775_p4, %p1769_p1 }
  0x63   :  { %1779 = shalt.err (!%p1776_p5)
}
  0x64   :  { %s1828_s4 = smov 512   ;;  %s1829_s24 = smov 32  }
  0x65   :  { %86 = dma.hbm_to_vmem [thread:$0]  %s2095_s5, 8192, %s81_s14, [#allocation13], %s1828_s4, %s1828_s4, %s1829_s24  }
  0x66   :  { %1806 = dma.done.wait [#allocation4], 512  }
  0x67   :  { %1807 = vsyncadd [#allocation4], 4294966784 }
  0x68   :  { %1808 = dma.done.wait [#allocation7], 1088  }
  0x69   :  { %1809 = vsyncadd [#allocation7], 4294966208 }
  0x6a   :  { %1810 = dma.done.wait [#allocation10], 2048  }
  0x6b   :  { %1811 = vsyncadd [#allocation10], 4294965248 }
  0x6c   :  { %1812 = dma.done.wait [#allocation13], 8192  }
  0x6d   :  { %1813 = vsyncadd [#allocation13], 4294959104  ;;  %v1961_v0 = vld [vmem:[%s2096_s6] ss:$0 sm:$0xff]  ;;  %v1966_v1 = vld [vmem:[%s2096_s6 + $0x1] ss:$0 sm:$0xff] }
  0x6e   :  { %v1971_v2 = vld [vmem:[%s2096_s6 + $0x2] ss:$0 sm:$0xff]  ;;  %v1976_v3 = vld [vmem:[%s2096_s6 + $0x3] ss:$0 sm:$0xff]  ;;  %v1981_v4 = vld [vmem:[%s2096_s6 + $0x4] sm:$0xff]  ;;  %s1985_s10 = smov 0  }
  0x6f   :  { %v1983_v5 = vld [vmem:[#allocation6] sm:$0xf] }
  0x70 LB: > { %s1359_s11 = sshll.u32 %s1818_s10, 2  ;;  %vm211_vm0 = vcmask 1043456   ;;  %vm162_vm1 = vcmask 31744   ;;  %s397_s6 = scalar_lea.vmem [#allocation2], %s1818_s10  ;;  %s1818_s10 = sphi %s1985_s10, %s119_s10  }
  0x71   : > { %s122_s12 = scalar_lea.vmem [#allocation3], %s1359_s11  ;;  %1513 = vmatprep.subr.msk.mxu0 %vm211_vm0, %v1983_v5  ;;  %1599 = vmatprep.subr.msk.mxu1 %vm211_vm0, %v1983_v5  ;;  %s119_s10 = sadd.s32 1, %s1818_s10  }
  0x72   : > { %v123_v6 = vld [vmem:[%s122_s12] sm:$0xf]  ;;  %1514 = vmatpush3.msk.msra.mxu0 %vm211_vm0, %v1983_v5  ;;  %1600 = vmatpush3.msk.msra.mxu1 %vm211_vm0, %v1983_v5  ;;  %p116_p6 = scmp.ge.s32.totalorder %s119_s10, 8  }
  0x73   : > { %130 = vxpose.xlu0.b32.start.end [1/1] (short) %v123_v6, 128  ;;  %vm1831_vm2 = vmmov (%p116_p6), 0   ;;  %v1627_v5 = vld [vmem:[#allocation8 + $0x18] sm:$0xff] (%p116_p6)   ;;  %s1833_s2 = smov (%p116_p6), [#allocation14]  }
  0x74   :  { %s1339_s3 = sshll.u32 (%p116_p6), %s1833_s2, 4  ;;  %s1340_s3 = int_to_ptr.vmem [resolvable:$true] %s1339_s3 }
  0x75   :  { %s1780_s13 = scalar_lea.vmem (%p116_p6), %s1340_s3, 1024  ;;  %p1785_p8 = scmp.lt.s32.totalorder (%p116_p6), %s1340_s3, %s1340_s3 }
  0x76   :  { %p1781_p7 = scmp.ne.s32.totalorder (%p116_p6), %s1340_s3, %s1780_s13  ;;  %p1786_p9 = scmp.lt.s32.totalorder (%p116_p6), %s1780_s13, %s1780_s13 }
  0x78   :  { %p1787_p10 = por (%p116_p6), %p1786_p9, %p1785_p8 }
  0x7a   :  { %p1788_p11 = pnand (%p116_p6), %p1787_p10, %p1781_p7 }
  0xf3   : > { %v146_v7 = vpop.trf.xlu0 }
  0xf4   : > { %1515 = vmatprep.mubr.msk.f32.mxu0 %vm162_vm1, %v146_v7 }
  0xf7   : > { %v147_v8 = vpop.trf.xlu0 }
  0xf8   : > { %1516 = vmatmul.mubr.msk.f32.vlgmr.msra.gmra.mrb[0].mxu0 %vm162_vm1, %v147_v8 }
  0xfb   : > { %v148_v9 = vpop.trf.xlu0 }
  0xfc   : > { %1518 = vmatprep.mubr.msk.f32.mxu0 %vm162_vm1, %v148_v9 }
  0xff   : > { %v149_v10 = vpop.trf.xlu0 }
 0x100   : > { %1519 = vmatmul.mubr.msk.f32.gmra.mrb[2].mxu0 %vm162_vm1, %v149_v10 }
 0x103   : > { %v150_v11 = vpop.trf.xlu0 }
 0x104   : > { %1521 = vmatprep.mubr.msk.f32.mxu0 %vm162_vm1, %v150_v11 }
 0x107   : > { %v151_v12 = vpop.trf.xlu0 }
 0x108   : > { %1522 = vmatmul.mubr.msk.f32.gmra.mrb[4].mxu0 %vm162_vm1, %v151_v12 }
 0x10b   : > { %v152_v13 = vpop.trf.xlu0 }
 0x10c   : > { %1524 = vmatprep.mubr.msk.f32.mxu0 %vm162_vm1, %v152_v13 }
 0x10f   : > { %v153_v14 = vpop.trf.xlu0 }
 0x110   : > { %1525 = vmatmul.mubr.msk.f32.gmra.mrb[6].mxu0 %vm162_vm1, %v153_v14 }
 0x113   : > { %v154_v15 = vpop.trf.xlu0 }
 0x114   : > { %1527 = vmatprep.mubr.msk.f32.mxu1 %vm162_vm1, %v154_v15 }
 0x117   : > { %v155_v16 = vpop.trf.xlu0 }
 0x118   : > { %1528 = vmatmul.mubr.msk.f32.vlgmr.msra.gmra.mrb[0].mxu1 %vm162_vm1, %v155_v16 }
 0x11b   : > { %v156_v17 = vpop.trf.xlu0 }
 0x11c   : > { %1530 = vmatprep.mubr.msk.f32.mxu1 %vm162_vm1, %v156_v17 }
 0x11f   : > { %v157_v18 = vpop.trf.xlu0 }
 0x120   : > { %1531 = vmatmul.mubr.msk.f32.gmra.mrb[2].mxu1 %vm162_vm1, %v157_v18 }
 0x123   : > { %v158_v19 = vpop.trf.xlu0 }
 0x124   : > { %1533 = vmatprep.mubr.msk.f32.mxu1 %vm162_vm1, %v158_v19 }
 0x127   : > { %v159_v20 = vpop.trf.xlu0 }
 0x128   : > { %1534 = vmatmul.mubr.msk.f32.gmra.mrb[4].mxu1 %vm162_vm1, %v159_v20 }
 0x12b   : > { %v160_v21 = vpop.trf.xlu0 }
 0x12c   : > { %1536 = vmatprep.mubr.msk.f32.mxu1 %vm162_vm1, %v160_v21 }
 0x12f   : > { %v161_v22 = vpop.trf.xlu0 }
 0x130   : > { %1537 = vmatmul.mubr.msk.f32.gmra.mrb[6].mxu1 %vm162_vm1, %v161_v22 }
 0x1cb   : > { %v1517_v23 = vpop.f32.mrb[0].mxu0 }
 0x1cc   : > { %v281_v24 = vpop.f32.mrb[1].mxu0  ;;  %v287_v27 = vadd.f32 %v1517_v23, %v1961_v0 }
 0x1cd   : > { %v282_v28 = vadd.f32 %v1961_v0, %v281_v24 }
 0x1ce   : > { %v361_v33 = vmax.f32 %v287_v27, 0.0 }
 0x1cf   : > { %v360_v35 = vmax.f32 %v282_v28, 0.0 }
 0x1d3   : > { %v1520_v25 = vpop.f32.mrb[2].mxu0 }
 0x1d4   : > { %v291_v26 = vpop.f32.mrb[3].mxu0  ;;  %v297_v39 = vadd.f32 %v1520_v25, %v1961_v0 }
 0x1d5   : > { %v292_v40 = vadd.f32 %v1961_v0, %v291_v26 }
 0x1d6   : > { %v363_v45 = vmax.f32 %v297_v39, 0.0  ;;  %v1628_v39 = vld [vmem:[#allocation8 + $0x20] sm:$0xff] (%p116_p6)  }
 0x1d7   : > { %v362_v47 = vmax.f32 %v292_v40, 0.0  ;;  %v1634_v40 = vld [vmem:[#allocation9 + $0x10] sm:$0xff] (%p116_p6)  }
 0x1db   : > { %v1523_v29 = vpop.f32.mrb[4].mxu0 }
 0x1dc   : > { %v307_v30 = vadd.f32 %v1523_v29, %v1961_v0  ;;  %v301_v31 = vpop.f32.mrb[5].mxu0 }
 0x1dd   : > { %v302_v32 = vadd.f32 %v1961_v0, %v301_v31 }
 0x1de   : > { %v365_v34 = vmax.f32 %v307_v30, 0.0 }
 0x1df   : > { %v364_v36 = vmax.f32 %v302_v32, 0.0 }
 0x1e0   : > { %v377_v37 = vmax.f32 %v361_v33, %v365_v34  ;;  %v1624_v34 = vld [vmem:[#allocation8] sm:$0xff] (%p116_p6)  }
 0x1e1   : > { %v376_v38 = vmax.f32 %v360_v35, %v364_v36  ;;  %v1830_v35 = vmov (%p116_p6), 0.0   ;;  %v1625_v36 = vld [vmem:[#allocation8 + $0x8] sm:$0xff] (%p116_p6)  }
 0x1e2   :  { %1539 = vmatprep.subr.bf16.mxu0 (%p116_p6), %v1830_v35  ;;  %1559 = vmatprep.subr.bf16.mxu1 (%p116_p6), %v1830_v35 }
 0x1e3   : > { %v1526_v41 = vpop.f32.mrb[6].mxu0  ;;  %1540 = vmatpush3.bf16.msra.mxu0 (%p116_p6), %v1624_v34  ;;  %1555 = vmatprep.mubr.msk.bf16.mxu0 (%p116_p6), %vm1831_vm2, %v1830_v35  ;;  %v784_v34 = vld [vmem:[#allocation12 + $0x180] sm:$0xff] (%p116_p6) }
 0x1e4   : > { %v317_v42 = vadd.f32 %v1526_v41, %v1961_v0  ;;  %v311_v43 = vpop.f32.mrb[7].mxu0  ;;  %1541 = vmatprep.subr.bf16.mxu0 (%p116_p6), %v1830_v35  ;;  %1575 = vmatprep.mubr.msk.bf16.mxu1 (%p116_p6), %vm1831_vm2, %v1830_v35  ;;  %v1629_v41 = vld [vmem:[#allocation8 + $0x28] sm:$0xff] (%p116_p6)  }
 0x1e5   : > { %v312_v44 = vadd.f32 %v1961_v0, %v311_v43  ;;  %v1630_v43 = vld [vmem:[#allocation8 + $0x30] sm:$0xff] (%p116_p6)  }
 0x1e6   : > { %v367_v46 = vmax.f32 %v317_v42, 0.0  ;;  %v1635_v42 = vld [vmem:[#allocation9 + $0x18] sm:$0xff] (%p116_p6)  }
 0x1e7   : > { %v366_v48 = vmax.f32 %v312_v44, 0.0  ;;  %1542 = vmatpush3.bf16.msra.mxu0 (%p116_p6), %v1625_v36  ;;  %v1636_v44 = vld [vmem:[#allocation9 + $0x20] sm:$0xff] (%p116_p6)  }
 0x1e8   : > { %v379_v49 = vmax.f32 %v363_v45, %v367_v46  ;;  %1543 = vmatprep.subr.bf16.mxu0 (%p116_p6), %v1830_v35  ;;  %v1631_v45 = vld [vmem:[#allocation8 + $0x38] sm:$0xff] (%p116_p6)  }
 0x1e9   : > { %v378_v50 = vmax.f32 %v362_v47, %v366_v48  ;;  %v1637_v47 = vld [vmem:[#allocation9 + $0x28] sm:$0xff] (%p116_p6)  }
 0x1eb   : > { %v1529_v51 = vpop.f32.mrb[0].mxu1 }
 0x1ec   : > { %v327_v52 = vadd.f32 %v1529_v51, %v1961_v0  ;;  %v321_v53 = vpop.f32.mrb[1].mxu1  ;;  %v1640_v51 = vld [vmem:[#allocation11] sm:$0xff] (%p116_p6)  }
 0x1ed   : > { %v322_v54 = vadd.f32 %v1961_v0, %v321_v53  ;;  %v1642_v53 = vld [vmem:[#allocation11 + $0x10] sm:$0xff] (%p116_p6)  }
 0x1ee   : > { %v369_v55 = vmax.f32 %v327_v52, 0.0  ;;  %v1641_v52 = vld [vmem:[#allocation11 + $0x8] sm:$0xff] (%p116_p6)  }
 0x1ef   : > { %v368_v56 = vmax.f32 %v322_v54, 0.0  ;;  %v1643_v54 = vld [vmem:[#allocation11 + $0x18] sm:$0xff] (%p116_p6)  }
 0x1f0   : > { %v381_v57 = vmax.f32 %v377_v37, %v369_v55  ;;  %v1626_v37 = vld [vmem:[#allocation8 + $0x10] sm:$0xff] (%p116_p6)   ;;  %v1644_v55 = vld [vmem:[#allocation11 + $0x20] sm:$0xff] (%p116_p6)  }
 0x1f1   : > { %v380_v58 = vmax.f32 %v376_v38, %v368_v56  ;;  %1544 = vmatpush3.bf16.msra.mxu0 (%p116_p6), %v1626_v37  ;;  %v1633_v38 = vld [vmem:[#allocation9 + $0x8] sm:$0xff] (%p116_p6)  }
 0x1f2   :  { %1545 = vmatprep.subr.bf16.mxu0 (%p116_p6), %v1830_v35  ;;  %v1645_v56 = vld [vmem:[#allocation11 + $0x28] sm:$0xff] (%p116_p6)  }
 0x1f3   : > { %v1532_v59 = vpop.f32.mrb[2].mxu1 }
 0x1f4   : > { %v337_v60 = vadd.f32 %v1532_v59, %v1961_v0  ;;  %v331_v61 = vpop.f32.mrb[3].mxu1 }
 0x1f5   : > { %v332_v62 = vadd.f32 %v1961_v0, %v331_v61  ;;  %1546 = vmatpush3.bf16.msra.mxu0 (%p116_p6), %v1627_v5 }
 0x1f6   : > { %v371_v63 = vmax.f32 %v337_v60, 0.0  ;;  %1547 = vmatprep.subr.bf16.mxu0 (%p116_p6), %v1830_v35 }
 0x1f7   : > { %v370_v6 = vmax.f32 %v332_v62, 0.0 }
 0x1f8   : > { %v383_v7 = vmax.f32 %v379_v49, %v371_v63  ;;  %v1638_v49 = vld [vmem:[#allocation9 + $0x30] sm:$0xff] (%p116_p6)  }
 0x1f9   : > { %v382_v8 = vmax.f32 %v378_v50, %v370_v6  ;;  %1548 = vmatpush3.bf16.msra.mxu0 (%p116_p6), %v1628_v39  ;;  %v1639_v50 = vld [vmem:[#allocation9 + $0x38] sm:$0xff] (%p116_p6)   ;;  %v1646_v63 = vld [vmem:[#allocation11 + $0x30] sm:$0xff] (%p116_p6)  }
 0x1fa   :  { %1549 = vmatprep.subr.bf16.mxu0 (%p116_p6), %v1830_v35  ;;  %v1647_v6 = vld [vmem:[#allocation11 + $0x38] sm:$0xff] (%p116_p6)  }
 0x1fb   : > { %v1535_v9 = vpop.f32.mrb[4].mxu1 }
 0x1fc   : > { %v347_v10 = vadd.f32 %v1535_v9, %v1961_v0  ;;  %v341_v11 = vpop.f32.mrb[5].mxu1  ;;  %v737_v9 = vld [vmem:[#allocation12 + $0x8] sm:$0xff] (%p116_p6) }
 0x1fd   : > { %v342_v12 = vadd.f32 %v1961_v0, %v341_v11  ;;  %1550 = vmatpush3.bf16.msra.mxu0 (%p116_p6), %v1629_v41  ;;  %v749_v41 = vld [vmem:[#allocation12 + $0x68] sm:$0xff] (%p116_p6) }
 0x1fe   : > { %v373_v13 = vmax.f32 %v347_v10, 0.0  ;;  %1551 = vmatprep.subr.bf16.mxu0 (%p116_p6), %v1830_v35 }
 0x1ff   : > { %v372_v14 = vmax.f32 %v342_v12, 0.0  ;;  %v741_v12 = vld [vmem:[#allocation12 + $0x28] sm:$0xff] (%p116_p6) }
 0x200   : > { %v385_v15 = vmax.f32 %v381_v57, %v373_v13  ;;  %v744_v13 = vld [vmem:[#allocation12 + $0x40] sm:$0xff] (%p116_p6) }
 0x201   : > { %v384_v16 = vmax.f32 %v380_v58, %v372_v14  ;;  %1552 = vmatpush3.bf16.msra.mxu0 (%p116_p6), %v1630_v43  ;;  %v748_v14 = vld [vmem:[#allocation12 + $0x60] sm:$0xff] (%p116_p6) }
 0x202   :  { %1553 = vmatprep.subr.bf16.mxu0 (%p116_p6), %v1830_v35 }
 0x203   : > { %v388_v17 = vmax.f32 %v384_v16, %v385_v15  ;;  %v1538_v18 = vpop.f32.mrb[6].mxu1  ;;  %v1408_v15 = vcombine.high (%p116_p6), %v737_v9, %v741_v12  ;;  %v1414_v16 = vcombine.high (%p116_p6), %v744_v13, %v748_v14 }
 0x204   : > { %v357_v19 = vadd.f32 %v1538_v18, %v1961_v0  ;;  %v351_v20 = vpop.f32.mrb[7].mxu1  ;;  %v752_v18 = vld [vmem:[#allocation12 + $0x80] sm:$0xff] (%p116_p6) }
 0x205   : > { %v352_v21 = vadd.f32 %v1961_v0, %v351_v20  ;;  %v1632_v0 = vld [vmem:[#allocation9] sm:$0xff] (%p116_p6)   ;;  %1554 = vmatpush3.bf16.msra.mxu0 (%p116_p6), %v1631_v45 }
 0x206   : > { %v375_v22 = vmax.f32 %v357_v19, 0.0  ;;  %1560 = vmatpush3.bf16.msra.mxu1 (%p116_p6), %v1632_v0  ;;  %1579 = vmatprep.subr.bf16.mxu0 (%p116_p6), %v1830_v35  ;;  %v756_v19 = vld [vmem:[#allocation12 + $0xa0] sm:$0xff] (%p116_p6) }
 0x207   : > { %v374_v23 = vmax.f32 %v352_v21, 0.0  ;;  %1561 = vmatprep.subr.bf16.mxu1 (%p116_p6), %v1830_v35  ;;  %v1422_v20 = vcombine.high (%p116_p6), %v752_v18, %v756_v19  ;;  %v1421_v21 = vcombine.low (%p116_p6), %v752_v18, %v756_v19  ;;  %v743_v19 = vld [vmem:[#allocation12 + $0x38] sm:$0xff] (%p116_p6) }
 0x208   : > { %v387_v24 = vmax.f32 %v383_v7, %v375_v22  ;;  %v736_v7 = vld [vmem:[#allocation12] sm:$0xff] (%p116_p6) }
 0x209   : > { %v386_v25 = vmax.f32 %v382_v8, %v374_v23  ;;  %v740_v8 = vld [vmem:[#allocation12 + $0x20] sm:$0xff] (%p116_p6) }
 0x20a   :  { %1562 = vmatpush3.bf16.msra.mxu1 (%p116_p6), %v1633_v38  ;;  %v1405_v10 = vcombine.low (%p116_p6), %v736_v7, %v740_v8  ;;  %v1406_v11 = vcombine.high (%p116_p6), %v736_v7, %v740_v8  ;;  %v760_v22 = vld [vmem:[#allocation12 + $0xc0] sm:$0xff] (%p116_p6) }
 0x20b   : > { %v389_v26 = vmax.f32 %v386_v25, %v387_v24  ;;  %1563 = vmatprep.subr.bf16.mxu1 (%p116_p6), %v1830_v35  ;;  %v764_v23 = vld [vmem:[#allocation12 + $0xe0] sm:$0xff] (%p116_p6) }
 0x20c   :  { %v1430_v24 = vcombine.high (%p116_p6), %v760_v22, %v764_v23  ;;  %v1429_v25 = vcombine.low (%p116_p6), %v760_v22, %v764_v23  ;;  %v792_v8 = vld [vmem:[#allocation12 + $0x1c0] sm:$0xff] (%p116_p6)  ;;  %v1832_v23 = vmov (%p116_p6), 0  }
 0x20d   : > { %v390_v27 = vmax.f32 %v388_v17, %v389_v26  ;;  %v1413_v17 = vcombine.low (%p116_p6), %v744_v13, %v748_v14  ;;  %v768_v26 = vld [vmem:[#allocation12 + $0x100] sm:$0xff] (%p116_p6) }
 0x20e   :  { %1564 = vmatpush3.bf16.msra.mxu1 (%p116_p6), %v1634_v40  ;;  %v745_v40 = vld [vmem:[#allocation12 + $0x48] sm:$0xff] (%p116_p6) }
 0x20f   : > { %v391_v28 = vrot.slane %v390_v27, 4  ;;  %1565 = vmatprep.subr.bf16.mxu1 (%p116_p6), %v1830_v35  ;;  %v1416_v45 = vcombine.high (%p116_p6), %v745_v40, %v749_v41 }
 0x211   : > { %v392_v29 = vmax.f32 %v390_v27, %v391_v28  ;;  %v772_v27 = vld [vmem:[#allocation12 + $0x120] sm:$0xff] (%p116_p6) }
 0x212   :  { %1566 = vmatpush3.bf16.msra.mxu1 (%p116_p6), %v1635_v42  ;;  %v1438_v28 = vcombine.high (%p116_p6), %v768_v26, %v772_v27 }
 0x213   : > { %v393_v30 = vrot.slane %v392_v29, 2  ;;  %1567 = vmatprep.subr.bf16.mxu1 (%p116_p6), %v1830_v35 }
 0x215   : > { %v394_v31 = vmax.f32 %v392_v29, %v393_v30  ;;  %118 = sbr.rel (!%p116_p6) target bundleno = 112 (0x70), region = 81  ;;  %v1437_v29 = vcombine.low (%p116_p6), %v768_v26, %v772_v27  ;;  %v776_v30 = vld [vmem:[#allocation12 + $0x140] sm:$0xff] (%p116_p6)  ;;  %v746_v27 = vld [vmem:[#allocation12 + $0x50] sm:$0xff] (%p116_p6) }
 0x216   :  { %1568 = vmatpush3.bf16.msra.mxu1 (%p116_p6), %v1636_v44 }
 0x217   : > { %v395_v32 = vrot.slane %v394_v31, 1  ;;  %1569 = vmatprep.subr.bf16.mxu1 (%p116_p6), %v1830_v35 }
 0x219   : > { %v396_v33 = vmax.f32 %v394_v31, %v395_v32  ;;  %v780_v31 = vld [vmem:[#allocation12 + $0x160] sm:$0xff] (%p116_p6) }
 0x21a   :  { %1570 = vmatpush3.bf16.msra.mxu1 (%p116_p6), %v1637_v47  ;;  %v1446_v32 = vcombine.high (%p116_p6), %v776_v30, %v780_v31  ;;  %v757_v47 = vld [vmem:[#allocation12 + $0xa8] sm:$0xff] (%p116_p6) }
 0x21b   : > { %398 = vst [vmem:[%s397_s6] sm:$0x1] %v396_v33  ;;  %1571 = vmatprep.subr.bf16.mxu1 (%p116_p6), %v1830_v35  ;;  %v1445_v33 = vcombine.low (%p116_p6), %v776_v30, %v780_v31  ;;  %v747_v30 = vld [vmem:[#allocation12 + $0x58] sm:$0xff] (%p116_p6) }
 0x21c   :  { %v751_v31 = vld [vmem:[#allocation12 + $0x78] sm:$0xff] }
 0x21e   :  { %1572 = vmatpush3.bf16.msra.mxu1 %v1638_v49 }
 0x21f   :  { %1573 = vmatprep.subr.bf16.mxu1 %v1830_v35 }
 0x222   :  { %v399_v46 = vld [vmem:[#allocation2] sm:$0xff]  ;;  %1574 = vmatpush3.bf16.msra.mxu1 %v1639_v50  ;;  %v761_v50 = vld [vmem:[#allocation12 + $0xc8] sm:$0xff] }
 0x223   :  { %v400_v48 = vpack.c.bf16 %v399_v46, %v399_v46  ;;  %1161 = vmatprep.subr.bf16.mxu1 %v1406_v11  ;;  %v753_v46 = vld [vmem:[#allocation12 + $0x88] sm:$0xff] }
 0x224   :  { %v1424_v49 = vcombine.high %v753_v46, %v757_v47 }
 0x225   :  { %1556 = vmatmul.mubr.bf16.vlgmr.msra.gmra.mrb[0].mxu0 %v400_v48  ;;  %v1415_v48 = vcombine.low %v745_v40, %v749_v41 }
 0x226   :  { %1595 = vmatprep.mubr.msk.bf16.mxu0 %vm1831_vm2, %v1830_v35  ;;  %1580 = vmatpush3.bf16.msra.mxu0 %v1640_v51  ;;  %v765_v51 = vld [vmem:[#allocation12 + $0xe8] sm:$0xff] }
 0x227   :  { %1581 = vmatprep.subr.bf16.mxu0 %v1830_v35 }
 0x22a   :  { %1582 = vmatpush3.bf16.msra.mxu0 %v1641_v52  ;;  %v1423_v52 = vcombine.low %v753_v46, %v757_v47 }
 0x22b   :  { %1583 = vmatprep.subr.bf16.mxu0 %v1830_v35 }
 0x22e   :  { %1584 = vmatpush3.bf16.msra.mxu0 %v1642_v53  ;;  %v769_v53 = vld [vmem:[#allocation12 + $0x108] sm:$0xff] }
 0x22f   :  { %1585 = vmatprep.subr.bf16.mxu0 %v1830_v35 }
 0x232   :  { %1586 = vmatpush3.bf16.msra.mxu0 %v1643_v54  ;;  %v773_v54 = vld [vmem:[#allocation12 + $0x128] sm:$0xff] }
 0x233   :  { %1587 = vmatprep.subr.bf16.mxu0 %v1830_v35 }
 0x236   :  { %1588 = vmatpush3.bf16.msra.mxu0 %v1644_v55  ;;  %v1431_v55 = vcombine.low %v761_v50, %v765_v51 }
 0x237   :  { %1589 = vmatprep.subr.bf16.mxu0 %v1830_v35 }
 0x23a   :  { %1590 = vmatpush3.bf16.msra.mxu0 %v1645_v56  ;;  %v1440_v56 = vcombine.high %v769_v53, %v773_v54 }
 0x23b   :  { %1591 = vmatprep.subr.bf16.mxu0 %v1830_v35 }
 0x23e   :  { %1592 = vmatpush3.bf16.msra.mxu0 %v1646_v63 }
 0x23f   :  { %1593 = vmatprep.subr.bf16.mxu0 %v1830_v35  ;;  %v788_v35 = vld [vmem:[#allocation12 + $0x1a0] sm:$0xff] }
 0x240   :  { %v1454_v36 = vcombine.high %v784_v34, %v788_v35  ;;  %v1453_v37 = vcombine.low %v784_v34, %v788_v35 }
 0x242   :  { %1594 = vmatpush3.bf16.msra.mxu0 %v1647_v6 }
 0x243   :  { %1202 = vmatprep.subr.bf16.mxu0 %v1408_v15  ;;  %v738_v15 = vld [vmem:[#allocation12 + $0x10] sm:$0xff] }
 0x2f8   :  { %v505_v57 = vpop.f32.mrb[0].mxu0 }
 0x2f9   :  { %v506_v58 = vadd.f32 %v1966_v1, %v505_v57  ;;  %v1557_v59 = vpop.f32.mrb[1].mxu0  ;;  %v1407_v1 = vcombine.low %v737_v9, %v741_v12  ;;  %v777_v57 = vld [vmem:[#allocation12 + $0x148] sm:$0xff]  ;;  %v796_v9 = vld [vmem:[#allocation12 + $0x1e0] sm:$0xff] }
 0x2fa   :  { %v508_v60 = vpop.f32.mrb[2].mxu0  ;;  %v1439_v59 = vcombine.low %v769_v53, %v773_v54  ;;  %v1462_v11 = vcombine.high %v792_v8, %v796_v9  ;;  %v797_v12 = vld [vmem:[#allocation12 + $0x1e8] sm:$0xff]  ;;  %v1461_v13 = vcombine.low %v792_v8, %v796_v9  ;;  %v790_v8 = vld [vmem:[#allocation12 + $0x1b0] sm:$0xff]  ;;  %v787_v9 = vld [vmem:[#allocation12 + $0x198] sm:$0xff] }
 0x2fb   :  { %v511_v61 = vpack.c.bf16 %v506_v58, %v506_v58  ;;  %v1558_v62 = vpop.f32.mrb[3].mxu0  ;;  %v781_v58 = vld [vmem:[#allocation12 + $0x168] sm:$0xff] }
 0x2fc   :  { %v1448_v60 = vcombine.high %v777_v57, %v781_v58  ;;  %v789_v62 = vld [vmem:[#allocation12 + $0x1a8] sm:$0xff]  ;;  %v1447_v63 = vcombine.low %v777_v57, %v781_v58  ;;  %v778_v57 = vld [vmem:[#allocation12 + $0x150] sm:$0xff] }
 0x2fd   :  { %1576 = vmatmul.mubr.bf16.vlgmr.msra.gmra.mrb[0].mxu1 %v511_v61  ;;  %v785_v61 = vld [vmem:[#allocation12 + $0x188] sm:$0xff]  ;;  %v782_v58 = vld [vmem:[#allocation12 + $0x170] sm:$0xff] }
 0x2fe   :  { %1162 = vmatpush1.bf16.msra.mxu1 %v1405_v10  ;;  %v1456_v6 = vcombine.high %v785_v61, %v789_v62  ;;  %v1455_v7 = vcombine.low %v785_v61, %v789_v62  ;;  %v793_v10 = vld [vmem:[#allocation12 + $0x1c8] sm:$0xff]  ;;  %1193 = vmatprep.mubr.bf16.mxu1 %v1832_v23 }
 0x2ff   :  { %1163 = vmatprep.subr.bf16.mxu1 %v1414_v16  ;;  %v1463_v14 = vcombine.low %v793_v10, %v797_v12  ;;  %v742_v16 = vld [vmem:[#allocation12 + $0x30] sm:$0xff] }
 0x300   :  { %v1410_v18 = vcombine.high %v738_v15, %v742_v16 }
 0x302   :  { %1164 = vmatpush1.bf16.msra.mxu1 %v1413_v17  ;;  %v739_v17 = vld [vmem:[#allocation12 + $0x18] sm:$0xff] }
 0x303   :  { %1165 = vmatprep.subr.bf16.mxu1 %v1422_v20  ;;  %v1409_v20 = vcombine.low %v738_v15, %v742_v16  ;;  %v1412_v22 = vcombine.high %v739_v17, %v743_v19  ;;  %v798_v15 = vld [vmem:[#allocation12 + $0x1f0] sm:$0xff]  ;;  %v795_v16 = vld [vmem:[#allocation12 + $0x1d8] sm:$0xff] }
 0x306   :  { %1166 = vmatpush1.bf16.msra.mxu1 %v1421_v21  ;;  %v1411_v21 = vcombine.low %v739_v17, %v743_v19  ;;  %v799_v17 = vld [vmem:[#allocation12 + $0x1f8] sm:$0xff] }
 0x307   :  { %1167 = vmatprep.subr.bf16.mxu1 %v1430_v24 }
 0x30a   :  { %1168 = vmatpush1.bf16.msra.mxu1 %v1429_v25 }
 0x30b   :  { %1169 = vmatprep.subr.bf16.mxu1 %v1438_v28 }
 0x30e   :  { %1170 = vmatpush1.bf16.msra.mxu1 %v1437_v29  ;;  %v750_v29 = vld [vmem:[#allocation12 + $0x70] sm:$0xff] }
 0x30f   :  { %1171 = vmatprep.subr.bf16.mxu1 %v1446_v32  ;;  %v1418_v35 = vcombine.high %v746_v27, %v750_v29 }
 0x312   :  { %1172 = vmatpush1.bf16.msra.mxu1 %v1445_v33 }
 0x313   :  { %1173 = vmatprep.subr.bf16.mxu1 %v1454_v36  ;;  %v1420_v36 = vcombine.high %v747_v30, %v751_v31 }
 0x316   :  { %1174 = vmatpush1.bf16.msra.mxu1 %v1453_v37  ;;  %v754_v37 = vld [vmem:[#allocation12 + $0x90] sm:$0xff] }
 0x317   :  { %1175 = vmatprep.subr.bf16.mxu1 %v1462_v11  ;;  %v1449_v11 = vcombine.low %v778_v57, %v782_v58 }
 0x31a   :  { %1176 = vmatpush1.bf16.msra.mxu1 %v1461_v13 }
 0x31b   :  { %1243 = vmatprep.subr.bf16.mxu1 %v1410_v18 }
 0x3d0   :  { %v616_v0 = vpop.f32.mrb[0].mxu1 }
 0x3d1   :  { %v617_v5 = vadd.f32 %v1971_v2, %v616_v0  ;;  %v1577_v38 = vpop.f32.mrb[1].mxu1  ;;  %v1432_v2 = vcombine.high %v761_v50, %v765_v51  ;;  %v758_v0 = vld [vmem:[#allocation12 + $0xb0] sm:$0xff] }
 0x3d2   :  { %v619_v39 = vpop.f32.mrb[2].mxu1  ;;  %v759_v38 = vld [vmem:[#allocation12 + $0xb8] sm:$0xff]  ;;  %v1426_v40 = vcombine.high %v754_v37, %v758_v0  ;;  %v1425_v46 = vcombine.low %v754_v37, %v758_v0  ;;  %v770_v50 = vld [vmem:[#allocation12 + $0x110] sm:$0xff] }
 0x3d3   :  { %v622_v42 = vmax.f32 %v617_v5, 0.0  ;;  %v1578_v43 = vpop.f32.mrb[3].mxu1  ;;  %v755_v5 = vld [vmem:[#allocation12 + $0x98] sm:$0xff]  ;;  %v1419_v39 = vcombine.low %v747_v30, %v751_v31  ;;  %v774_v51 = vld [vmem:[#allocation12 + $0x130] sm:$0xff] }
 0x3d4   :  { %v1428_v41 = vcombine.high %v755_v5, %v759_v38  ;;  %v766_v43 = vld [vmem:[#allocation12 + $0xf0] sm:$0xff]  ;;  %v1427_v47 = vcombine.low %v755_v5, %v759_v38  ;;  %v1441_v61 = vcombine.low %v770_v50, %v774_v51 }
 0x3d5   :  { %v623_v44 = vpack.c.bf16 %v622_v42, %v622_v42  ;;  %v762_v42 = vld [vmem:[#allocation12 + $0xd0] sm:$0xff] }
 0x3d6   :  { %v1433_v53 = vcombine.low %v762_v42, %v766_v43 }
 0x3d7   :  { %1596 = vmatmul.mubr.bf16.vlgmr.msra.gmra.mrb[4].mxu0 %v623_v44  ;;  %v763_v44 = vld [vmem:[#allocation12 + $0xd8] sm:$0xff] }
 0x3d8   :  { %1203 = vmatpush1.bf16.msra.mxu0 %v1407_v1  ;;  %v1464_v1 = vcombine.high %v793_v10, %v797_v12  ;;  %1234 = vmatprep.mubr.bf16.mxu0 %v1832_v23  ;;  %v791_v10 = vld [vmem:[#allocation12 + $0x1b8] sm:$0xff] }
 0x3d9   :  { %1204 = vmatprep.subr.bf16.mxu0 %v1416_v45  ;;  %v767_v45 = vld [vmem:[#allocation12 + $0xf8] sm:$0xff]  ;;  %v1459_v19 = vcombine.low %v787_v9, %v791_v10 }
 0x3da   :  { %v1435_v54 = vcombine.low %v763_v44, %v767_v45 }
 0x3dc   :  { %1205 = vmatpush1.bf16.msra.mxu0 %v1415_v48  ;;  %v1434_v48 = vcombine.high %v762_v42, %v766_v43 }
 0x3dd   :  { %1206 = vmatprep.subr.bf16.mxu0 %v1424_v49  ;;  %v1436_v49 = vcombine.high %v763_v44, %v767_v45 }
 0x3e0   :  { %1207 = vmatpush1.bf16.msra.mxu0 %v1423_v52  ;;  %v771_v52 = vld [vmem:[#allocation12 + $0x118] sm:$0xff] }
 0x3e1   :  { %1208 = vmatprep.subr.bf16.mxu0 %v1432_v2  ;;  %v775_v2 = vld [vmem:[#allocation12 + $0x138] sm:$0xff] }
 0x3e2   :  { %v1443_v62 = vcombine.low %v771_v52, %v775_v2 }
 0x3e4   :  { %1209 = vmatpush1.bf16.msra.mxu0 %v1431_v55  ;;  %v1442_v55 = vcombine.high %v770_v50, %v774_v51 }
 0x3e5   :  { %1210 = vmatprep.subr.bf16.mxu0 %v1440_v56  ;;  %v1444_v56 = vcombine.high %v771_v52, %v775_v2 }
 0x3e8   :  { %1211 = vmatpush1.bf16.msra.mxu0 %v1439_v59  ;;  %v779_v59 = vld [vmem:[#allocation12 + $0x158] sm:$0xff] }
 0x3e9   :  { %1212 = vmatprep.subr.bf16.mxu0 %v1448_v60  ;;  %v783_v60 = vld [vmem:[#allocation12 + $0x178] sm:$0xff] }
 0x3ea   :  { %v1451_v12 = vcombine.low %v779_v59, %v783_v60 }
 0x3ec   :  { %1213 = vmatpush1.bf16.msra.mxu0 %v1447_v63  ;;  %v1450_v63 = vcombine.high %v778_v57, %v782_v58 }
 0x3ed   :  { %1214 = vmatprep.subr.bf16.mxu0 %v1456_v6  ;;  %v1452_v6 = vcombine.high %v779_v59, %v783_v60 }
 0x3f0   :  { %1215 = vmatpush1.bf16.msra.mxu0 %v1455_v7  ;;  %v786_v7 = vld [vmem:[#allocation12 + $0x190] sm:$0xff] }
 0x3f1   :  { %1216 = vmatprep.subr.bf16.mxu0 %v1464_v1  ;;  %v1458_v13 = vcombine.high %v786_v7, %v790_v8  ;;  %v794_v1 = vld [vmem:[#allocation12 + $0x1d0] sm:$0xff]  ;;  %v1457_v18 = vcombine.low %v786_v7, %v790_v8 }
 0x3f4   :  { %1217 = vmatpush1.bf16.msra.mxu0 %v1463_v14  ;;  %v1460_v14 = vcombine.high %v787_v9, %v791_v10 }
 0x3f5   :  { %1284 = vmatprep.subr.bf16.mxu0 %v1412_v22  ;;  %v1465_v22 = vcombine.low %v794_v1, %v798_v15 }
 0x4aa   :  { %v728_v24 = vpop.f32.mrb[4].mxu0 }
 0x4ab   :  { %v729_v25 = vadd.f32 %v1976_v3, %v728_v24  ;;  %v1597_v26 = vpop.f32.mrb[5].mxu0  ;;  %v1417_v3 = vcombine.low %v746_v27, %v750_v29  ;;  %v801_v24 = vlaneseq }
 0x4ac   :  { %v731_v28 = vpop.f32.mrb[6].mxu0 }
 0x4ad   :  { %v734_v32 = vmax.f32 %v729_v25, 0.0  ;;  %v1598_v33 = vpop.f32.mrb[7].mxu0  ;;  %v802_v25 = vshrl.u32 %v801_v24, 7 }
 0x4af   :  { %v2064_v34 = vpack.c.bf16 %v734_v32, %v734_v32  ;;  %v803_v26 = vsub.s32 0, %v802_v25  ;;  %v811_v27 = vsub.s32 2, %v802_v25  ;;  %v807_v28 = vsub.s32 1, %v802_v25 }
 0x4b0   :  { %v815_v29 = vsub.s32 3, %v802_v25  ;;  %v819_v43 = vsub.s32 4, %v802_v25  ;;  %v827_v44 = vsub.s32 6, %v802_v25  ;;  %v823_v45 = vsub.s32 5, %v802_v25 }
 0x4b1   :  { %1194 = vmatmul.mubr.bf16.vlgmr.msra.gmra.mrb[4].mxu1 %v2064_v34  ;;  %1235 = vmatmul.mubr.bf16.vlgmr.msra.gmra.mrb[8].mxu0 %v2064_v34  ;;  %v804_v30 = vrot.slane %v1981_v4, %v803_v26  ;;  %v812_v31 = vrot.slane %v1981_v4, %v811_v27  ;;  %v808_v32 = vrot.slane %v1981_v4, %v807_v28 }
 0x4b2   :  { %1244 = vmatpush1.bf16.msra.mxu1 %v1409_v20  ;;  %1285 = vmatpush1.bf16.msra.mxu0 %v1411_v21  ;;  %v1466_v20 = vcombine.high %v794_v1, %v798_v15  ;;  %v1468_v21 = vcombine.high %v795_v16, %v799_v17  ;;  %v816_v33 = vrot.slane %v1981_v4, %v815_v29 }
 0x4b3   :  { %1245 = vmatprep.subr.bf16.mxu1 %v1418_v35  ;;  %1286 = vmatprep.subr.bf16.mxu0 %v1420_v36 }
 0x4b4   :  { %1275 = vmatprep.mubr.bf16.mxu1 %v1832_v23  ;;  %1316 = vmatprep.mubr.bf16.mxu0 %v1832_v23  ;;  %v1467_v23 = vcombine.low %v795_v16, %v799_v17 }
 0x4b6   :  { %1246 = vmatpush1.bf16.msra.mxu1 %v1417_v3  ;;  %1287 = vmatpush1.bf16.msra.mxu0 %v1419_v39 }
 0x4b7   :  { %1247 = vmatprep.subr.bf16.mxu1 %v1426_v40  ;;  %1288 = vmatprep.subr.bf16.mxu0 %v1428_v41 }
 0x4ba   :  { %1248 = vmatpush1.bf16.msra.mxu1 %v1425_v46  ;;  %1289 = vmatpush1.bf16.msra.mxu0 %v1427_v47  ;;  %v831_v46 = vsub.s32 7, %v802_v25  ;;  %v820_v47 = vrot.slane %v1981_v4, %v819_v43 }
 0x4bb   :  { %1249 = vmatprep.subr.bf16.mxu1 %v1434_v48  ;;  %1290 = vmatprep.subr.bf16.mxu0 %v1436_v49  ;;  %v828_v48 = vrot.slane %v1981_v4, %v827_v44  ;;  %v824_v49 = vrot.slane %v1981_v4, %v823_v45 }
 0x4bc   :  { %v832_v50 = vrot.slane %v1981_v4, %v831_v46 }
 0x4be   :  { %1250 = vmatpush1.bf16.msra.mxu1 %v1433_v53  ;;  %1291 = vmatpush1.bf16.msra.mxu0 %v1435_v54 }
 0x4bf   :  { %1251 = vmatprep.subr.bf16.mxu1 %v1442_v55  ;;  %1292 = vmatprep.subr.bf16.mxu0 %v1444_v56 }
 0x4c2   :  { %1252 = vmatpush1.bf16.msra.mxu1 %v1441_v61  ;;  %1293 = vmatpush1.bf16.msra.mxu0 %v1443_v62 }
 0x4c3   :  { %1253 = vmatprep.subr.bf16.mxu1 %v1450_v63  ;;  %1294 = vmatprep.subr.bf16.mxu0 %v1452_v6 }
 0x4c6   :  { %1254 = vmatpush1.bf16.msra.mxu1 %v1449_v11  ;;  %1295 = vmatpush1.bf16.msra.mxu0 %v1451_v12 }
 0x4c7   :  { %1255 = vmatprep.subr.bf16.mxu1 %v1458_v13  ;;  %1296 = vmatprep.subr.bf16.mxu0 %v1460_v14 }
 0x4ca   :  { %1256 = vmatpush1.bf16.msra.mxu1 %v1457_v18  ;;  %1297 = vmatpush1.bf16.msra.mxu0 %v1459_v19 }
 0x4cb   :  { %1257 = vmatprep.subr.bf16.mxu1 %v1466_v20  ;;  %1298 = vmatprep.subr.bf16.mxu0 %v1468_v21 }
 0x4ce   :  { %1258 = vmatpush1.bf16.msra.mxu1 %v1465_v22  ;;  %1299 = vmatpush1.bf16.msra.mxu0 %v1467_v23 }
 0x4d1   :  { %1276 = vmatmul.mubr.bf16.vlgmr.msra.gmra.mrb[8].mxu1 %v2064_v34  ;;  %1317 = vmatmul.mubr.bf16.vlgmr.msra.gmra.mrb[12].mxu0 %v2064_v34 }
 0x584   :  { %v1195_v35 = vpop.f32.mrb[4].mxu1  ;;  %v1236_v36 = vpop.f32.mrb[8].mxu0 }
 0x585   :  { %v1196_v37 = vadd.f32 %v1195_v35, %v804_v30  ;;  %v1237_v0 = vadd.f32 %v1236_v36, %v812_v31  ;;  %v1197_v5 = vpop.f32.mrb[5].mxu1  ;;  %v1238_v34 = vpop.f32.mrb[9].mxu0 }
 0x586   :  { %v1198_v38 = vadd.f32 %v1197_v5, %v808_v32  ;;  %v1239_v3 = vadd.f32 %v1238_v34, %v816_v33  ;;  %v1199_v39 = vpop.f32.mrb[6].mxu1  ;;  %v1240_v40 = vpop.f32.mrb[10].mxu0 }
 0x587   :  { %1325 = vst [vmem:[#allocation14] sm:$0xff] %v1196_v37  ;;  %1327 = vst [vmem:[#allocation14 + $0x10] sm:$0xff] %v1237_v0  ;;  %v1200_v41 = vpop.f32.mrb[7].mxu1  ;;  %v1241_v42 = vpop.f32.mrb[11].mxu0 }
 0x588   :  { %1326 = vst [vmem:[#allocation14 + $0x8] sm:$0xff] %v1198_v38  ;;  %1328 = vst [vmem:[#allocation14 + $0x18] sm:$0xff] %v1239_v3 }
 0x5a4   :  { %v1277_v51 = vpop.f32.mrb[8].mxu1  ;;  %v1318_v52 = vpop.f32.mrb[12].mxu0 }
 0x5a5   :  { %v1278_v2 = vadd.f32 %v1277_v51, %v820_v47  ;;  %v1319_v53 = vadd.f32 %v1318_v52, %v828_v48  ;;  %v1279_v54 = vpop.f32.mrb[9].mxu1  ;;  %v1320_v55 = vpop.f32.mrb[13].mxu0 }
 0x5a6   :  { %v1280_v56 = vadd.f32 %v1279_v54, %v824_v49  ;;  %v1321_v57 = vadd.f32 %v1320_v55, %v832_v50  ;;  %v1281_v58 = vpop.f32.mrb[10].mxu1  ;;  %v1322_v59 = vpop.f32.mrb[14].mxu0 }
 0x5a7   :  { %1329 = vst [vmem:[#allocation14 + $0x20] sm:$0xff] %v1278_v2  ;;  %1331 = vst [vmem:[#allocation14 + $0x30] sm:$0xff] %v1319_v53  ;;  %v1282_v60 = vpop.f32.mrb[11].mxu1  ;;  %v1323_v61 = vpop.f32.mrb[15].mxu0 }
 0x5a8   :  { %1330 = vst [vmem:[#allocation14 + $0x28] sm:$0xff] %v1280_v56  ;;  %1332 = vst [vmem:[#allocation14 + $0x38] sm:$0xff] %v1321_v57 }
 0x5a9   :  { %1791 = shalt.err (!%p1788_p11)
}
 0x5aa   :  { %s1792_s17 = scalar_lea.hbm %s2097_s7, 1024 }
 0x5ab   :  { %p1793_p12 = scmp.ne.s32.totalorder %s2097_s7, %s1792_s17  ;;  %p1796_p13 = scmp.lt.u32.totalorder %s1792_s17, %s2097_s7 }
 0x5ad   :  { %p1798_p0 = pnand %p1796_p13, %p1793_p12 }
 0x5af   :  { %1801 = shalt.err (!%p1798_p0)
}
 0x5b0   :  { %1342 = dma.vmem_to_hbm [thread:$0]  %s1340_s3, 1024, %s2097_s7, [#allocation5]  }
 0x5b1   :  { %1814 = dma.done.wait [#allocation5], 1024  }
 0x5b2   :  { %1815 = vsyncadd [#allocation5], 4294966272 }
 0x5b3   :  { %1346 = vsyncpa [#allocation4], 1 }
 0x5b4   :  { %1347 = vsyncpa [#allocation7], 1 }
 0x5b5   :  { %1348 = vsyncpa [#allocation10], 1 }
 0x5b6   :  { %1349 = vsyncpa [#allocation13], 1 }
 0x5b7   :  { %1350 = vsyncpa [#allocation5], 1 }

</bundles_post_ra>
